<compile_context>
chip_gen: v5e
topology: v5e:2x2
jax: 0.10.0
libtpu: 0.0.40
codegen_flags: <defaults>
</compile_context>

<pallas_src>
import functools
import math

import jax
import jax.numpy as jnp
import numpy as np
from jax.experimental import pallas as pl
from jax.experimental.pallas import tpu as pltpu


# ---------------------------------------------------------------- in-kernel helpers

def _layernorm(x, w, b, eps=1e-6):
    m = jnp.mean(x, axis=-1, keepdims=True)
    v = jnp.mean((x - m) ** 2, axis=-1, keepdims=True)
    return (x - m) * jax.lax.rsqrt(v + eps) * w + b


def _gelu(x):
    # TODO(synk): DINOv2's nn.GELU is the exact erf form; tanh approximation keeps the op
    # on the EUP and is within tolerance.
    c = math.sqrt(2.0 / math.pi)
    return 0.5 * x * (1.0 + jnp.tanh(c * (x + 0.044715 * x * x * x)))


# ---------------------------------------------------------------- Pallas kernels

def _patch_embed_kernel(x_ref, w_ref, b_ref, o_ref):
    # out = x @ w + b   (patch-embed conv with kernel=stride=p lowered to a matmul)
    o_ref[...] = (jnp.dot(x_ref[...], w_ref[...],
                          preferred_element_type=jnp.float32) + b_ref[...])


def _encoder_kernel(x_ref, ln1w, ln1b, qkvw, qkvb, projw, projb, g1,
                    ln2w, ln2b, fc1w, fc1b, fc2w, fc2b, g2,
                    normw, normb, o_ref, *, num_heads, valid_tokens):
    """Grid = (batch, block). Output block is VMEM-resident across the block axis; per-block
    weights are streamed via their index_map (block id) with default double buffering."""
    l = pl.program_id(1)

    @pl.when(l == 0)
    def _():
        o_ref[0] = x_ref[0]

    x = o_ref[0]                                   # (Tp, D) f32 residual stream
    Tp, D = x.shape
    dh = D // num_heads
    scale = dh ** -0.5
    bf16 = jnp.bfloat16

    # ---- multi-head self-attention (all heads batched) ----
    h = _layernorm(x, ln1w[0], ln1b[0])
    qkv = jnp.dot(h.astype(bf16), qkvw[0],
                  preferred_element_type=jnp.float32) + qkvb[0]      # (Tp, 3D)
    qs = qkv[:, 0:D] * scale
    ks = qkv[:, D:2 * D]
    vs = qkv[:, 2 * D:3 * D]
    # head-major (H, Tp, dh) layout via leading-axis stack of lane slices
    q = jnp.stack([qs[:, i * dh:(i + 1) * dh] for i in range(num_heads)], axis=0)
    k = jnp.stack([ks[:, i * dh:(i + 1) * dh] for i in range(num_heads)], axis=0)
    v = jnp.stack([vs[:, i * dh:(i + 1) * dh] for i in range(num_heads)], axis=0)

    s = jnp.einsum('htd,hsd->hts', q.astype(bf16), k.astype(bf16),
                   preferred_element_type=jnp.float32)               # (H, Tp, Tp)
    if valid_tokens < Tp:                                            # static padding mask
        key_id = jax.lax.broadcasted_iota(jnp.int32, s.shape, 2)
        s = jnp.where(key_id < valid_tokens, s, jnp.float32(-1e30))
    s = s - jnp.max(s, axis=-1, keepdims=True)
    p = jnp.exp(s)
    p = p * pl.reciprocal(jnp.sum(p, axis=-1, keepdims=True), approx=True)

    o = jnp.einsum('hts,hsd->htd', p.astype(bf16), v.astype(bf16),
                   preferred_element_type=jnp.float32)               # (H, Tp, dh)
    o = jnp.concatenate([o[i] for i in range(num_heads)], axis=-1)   # (Tp, D)
    attn = jnp.dot(o.astype(bf16), projw[0],
                   preferred_element_type=jnp.float32) + projb[0]    # one (T,D)@(D,D)
    x = x + g1[0] * attn                                             # LayerScale + residual

    # ---- MLP ----
    h2 = _layernorm(x, ln2w[0], ln2b[0])
    m = jnp.dot(h2.astype(bf16), fc1w[0],
                preferred_element_type=jnp.float32) + fc1b[0]
    m = _gelu(m)
    m = jnp.dot(m.astype(bf16), fc2w[0],
                preferred_element_type=jnp.float32) + fc2b[0]
    x = x + g2[0] * m                                                # LayerScale + residual

    o_ref[0] = x

    @pl.when(l == pl.num_programs(1) - 1)
    def _():
        o_ref[0] = _layernorm(x, normw[...], normb[...])             # final norm, fused


# ---------------------------------------------------------------- pallas_call wrappers

def _pallas_patch_embed(x2d, w, b):
    M, K = x2d.shape
    N = w.shape[1]
    tile_m = M if M <= 256 else 256
    return pl.pallas_call(
        _patch_embed_kernel,
        out_shape=jax.ShapeDtypeStruct((M, N), jnp.float32),
        grid=(pl.cdiv(M, tile_m),),
        in_specs=[pl.BlockSpec((tile_m, K), lambda i: (i, 0)),
                  pl.BlockSpec((K, N), lambda i: (0, 0)),
                  pl.BlockSpec((1, N), lambda i: (0, 0))],
        out_specs=pl.BlockSpec((tile_m, N), lambda i: (i, 0)),
        compiler_params=pltpu.CompilerParams(dimension_semantics=("parallel",)),
    )(x2d, w, b)


def _wspec(w):
    # per-block weight, stacked on a leading depth axis; indexed by the block grid axis
    blk = (1,) + tuple(w.shape[1:])
    nzeros = len(blk) - 1
    return pl.BlockSpec(blk, lambda b, l, _n=nzeros: (l,) + (0,) * _n)


def _pallas_encoder(tok, weights, norm_w, norm_b, num_heads, *, valid_tokens):
    B, Tp, D = tok.shape
    depth = weights[0].shape[0]
    in_specs = ([pl.BlockSpec((1, Tp, D), lambda b, l: (b, 0, 0))]
                + [_wspec(w) for w in weights]
                + [pl.BlockSpec(norm_w.shape, lambda b, l: (0, 0)),
                   pl.BlockSpec(norm_b.shape, lambda b, l: (0, 0))])
    return pl.pallas_call(
        functools.partial(_encoder_kernel, num_heads=num_heads,
                          valid_tokens=valid_tokens),
        out_shape=jax.ShapeDtypeStruct((B, Tp, D), jnp.float32),
        grid=(B, depth),
        in_specs=in_specs,
        out_specs=pl.BlockSpec((1, Tp, D), lambda b, l: (b, 0, 0)),
        compiler_params=pltpu.CompilerParams(
            dimension_semantics=("parallel", "arbitrary"),
            vmem_limit_bytes=64 * 1024 * 1024),
    )(tok, *weights, norm_w, norm_b)


# ---------------------------------------------------------------- DINOV2Encoder.forward

def dinov2_encoder_forward(x, params):
    """Equivalent of DINOV2Encoder.forward (is_3d=False, n_last_blocks=1):
       encoder.forward_features(x)['x_norm_patchtokens']."""
    B, C, H, W = x.shape
    p = params['patch_size']
    D = params['embed_dim']
    nh, nw = H // p, W // p
    nP = nh * nw
    T = nP + 1
    Tp = ((T + 7) // 8) * 8                      # pad tokens to a sublane multiple

    # Patch-embed conv (kernel=stride=p) as an M-tiled matmul (bf16 operands, f32 acc).
    patches = x.reshape(B, C, nh, p, nw, p).transpose(0, 2, 4, 1, 3, 5)
    patches = patches.reshape(B * nP, C * p * p).astype(jnp.bfloat16)
    w_flat = params['patch_w'].reshape(D, C * p * p).T.astype(jnp.bfloat16)
    b_flat = params['patch_b'].reshape(1, D).astype(jnp.float32)
    tok = _pallas_patch_embed(patches, w_flat, b_flat).reshape(B, nP, D)

    # cls token + positional embedding (elementwise glue), then pad token axis.
    cls = jnp.broadcast_to(params['cls_token'], (B, 1, D)).astype(jnp.float32)
    tok = jnp.concatenate([cls, tok], axis=1) + params['pos_embed']
    if Tp > T:
        tok = jnp.pad(tok, ((0, 0), (0, Tp - T), (0, 0)))

    # Stack per-block weights on a leading depth axis; big matrices in bf16.
    bf = jnp.bfloat16

    def stack(name, dtype=jnp.float32):
        return jnp.stack([blk[name] for blk in params['blocks']]).astype(dtype)

    weights = [
        stack('ln1_w'), stack('ln1_b'),
        stack('qkv_w', bf), stack('qkv_b'),
        stack('proj_w', bf), stack('proj_b'), stack('gamma1'),
        stack('ln2_w'), stack('ln2_b'),
        stack('fc1_w', bf), stack('fc1_b'),
        stack('fc2_w', bf), stack('fc2_b'), stack('gamma2'),
    ]

    tok = _pallas_encoder(tok, weights, params['norm_w'], params['norm_b'],
                          params['num_heads'], valid_tokens=T)

    # x_norm_patchtokens: drop the cls token and padded rows.
    return tok[:, 1:T, :]


# ---------------------------------------------------------------- params & pure-JAX reference

def init_params(key, *, in_chans=4, img_size=16, patch_size=8, embed_dim=32,
                depth=2, num_heads=2, mlp_ratio=4):
    n_tokens = (img_size // patch_size) ** 2 + 1
    hidden = embed_dim * mlp_ratio
    keys = jax.random.split(key, 4 + depth)

    def nrm(k, shape, s=0.02):
        return (s * jax.random.normal(k, shape)).astype(jnp.float32)

    params = dict(
        patch_size=patch_size, embed_dim=embed_dim, num_heads=num_heads,
        patch_w=nrm(keys[0], (embed_dim, in_chans, patch_size, patch_size)),
        patch_b=jnp.zeros((embed_dim,), jnp.float32),
        cls_token=nrm(keys[1], (1, 1, embed_dim)),
        pos_embed=nrm(keys[2], (1, n_tokens, embed_dim)),
        norm_w=jnp.ones((1, embed_dim), jnp.float32),
        norm_b=jnp.zeros((1, embed_dim), jnp.float32),
        blocks=[],
    )
    for d in range(depth):
        bk = jax.random.split(keys[4 + d], 4)
        params['blocks'].append(dict(
            ln1_w=jnp.ones((1, embed_dim), jnp.float32),
            ln1_b=jnp.zeros((1, embed_dim), jnp.float32),
            qkv_w=nrm(bk[0], (embed_dim, 3 * embed_dim)),
            qkv_b=jnp.zeros((1, 3 * embed_dim), jnp.float32),
            proj_w=nrm(bk[1], (embed_dim, embed_dim)),
            proj_b=jnp.zeros((1, embed_dim), jnp.float32),
            gamma1=jnp.ones((1, embed_dim), jnp.float32),
            ln2_w=jnp.ones((1, embed_dim), jnp.float32),
            ln2_b=jnp.zeros((1, embed_dim), jnp.float32),
            fc1_w=nrm(bk[2], (embed_dim, hidden)),
            fc1_b=jnp.zeros((1, hidden), jnp.float32),
            fc2_w=nrm(bk[3], (hidden, embed_dim)),
            fc2_b=jnp.zeros((1, embed_dim), jnp.float32),
            gamma2=jnp.ones((1, embed_dim), jnp.float32),
        ))
    return params


def reference_forward(x, params):
    B, C, H, W = x.shape
    p = params['patch_size']; D = params['embed_dim']
    nh, nw = H // p, W // p
    patches = x.reshape(B, C, nh, p, nw, p).transpose(0, 2, 4, 1, 3, 5)
    patches = patches.reshape(B, nh * nw, C * p * p)
    tok = patches @ params['patch_w'].reshape(D, -1).T + params['patch_b']
    cls = jnp.broadcast_to(params['cls_token'], (B, 1, D))
    tok = jnp.concatenate([cls, tok], axis=1) + params['pos_embed']
    H_ = params['num_heads']; dh = D // H_
    for blk in params['blocks']:
        h = _layernorm(tok, blk['ln1_w'], blk['ln1_b'])
        qkv = h @ blk['qkv_w'] + blk['qkv_b']
        q, k, v = qkv[..., :D], qkv[..., D:2 * D], qkv[..., 2 * D:]
        q = q.reshape(B, -1, H_, dh).transpose(0, 2, 1, 3) * (dh ** -0.5)
        k = k.reshape(B, -1, H_, dh).transpose(0, 2, 1, 3)
        v = v.reshape(B, -1, H_, dh).transpose(0, 2, 1, 3)
        a = jax.nn.softmax(jnp.einsum('bhtd,bhsd->bhts', q, k), axis=-1)
        o = jnp.einsum('bhts,bhsd->bhtd', a, v).transpose(0, 2, 1, 3).reshape(B, -1, D)
        tok = tok + blk['gamma1'] * (o @ blk['proj_w'] + blk['proj_b'])
        h2 = _layernorm(tok, blk['ln2_w'], blk['ln2_b'])
        m = _gelu(h2 @ blk['fc1_w'] + blk['fc1_b'])
        tok = tok + blk['gamma2'] * (m @ blk['fc2_w'] + blk['fc2_b'])
    tok = _layernorm(tok, params['norm_w'], params['norm_b'])
    return tok[:, 1:, :]


# ---------------------------------------------------------------- main

if __name__ == "__main__":
    key = jax.random.PRNGKey(0)
    kx, kp = jax.random.split(key)
    x = jax.random.normal(kx, (2, 4, 16, 16), dtype=jnp.float32)   # NCHW
    params = init_params(kp)

    out = dinov2_encoder_forward(x, params)
    out = jax.block_until_ready(out)

    ref = reference_forward(x, params)
    assert out.shape == (2, 4, 32), out.shape
    # bf16 matmuls (autocast-style) vs f32 reference -> slightly looser tolerance.
    np.testing.assert_allclose(np.asarray(out), np.asarray(ref), rtol=3e-2, atol=3e-2)
    print("KERNEL_OK")
</pallas_src>

<mosaic_0001>
module attributes {stable_mosaic.version = 11 : i64} {
  func.func @_patch_embed_kernel(%arg0: i32, %arg1: memref<8x256xbf16, #tpu.memory_space<vmem>>, %arg2: memref<256x32xbf16, #tpu.memory_space<vmem>>, %arg3: memref<1x32xf32, #tpu.memory_space<vmem>>, %arg4: memref<8x32xf32, #tpu.memory_space<vmem>>) attributes {dimension_semantics = [#tpu.dimension_semantics<parallel>], iteration_bounds = array<i64: 1>, scalar_prefetch = 0 : i64, scratch_operands = 0 : i64, tpu.core_type = #tpu.core_type<tc>, window_params = [{transform_indices = @transform_0, window_bounds = array<i64: 8, 256>}, {pipeline_mode = #tpu.pipeline_mode<synchronous>, transform_indices = @transform_1, window_bounds = array<i64: 256, 32>}, {pipeline_mode = #tpu.pipeline_mode<synchronous>, transform_indices = @transform_2, window_bounds = array<i64: 1, 32>}, {transform_indices = @transform_3, window_bounds = array<i64: 8, 32>}]} {
    %c0 = arith.constant 0 : index
    %c0_0 = arith.constant 0 : index
    %0 = vector.load %arg1[%c0, %c0_0] : memref<8x256xbf16, #tpu.memory_space<vmem>>, vector<8x256xbf16>
    %c0_1 = arith.constant 0 : index
    %c0_2 = arith.constant 0 : index
    %1 = vector.load %arg2[%c0_1, %c0_2] : memref<256x32xbf16, #tpu.memory_space<vmem>>, vector<256x32xbf16>
    %cst = arith.constant dense<0.000000e+00> : vector<8x32xf32>
    %2 = tpu.matmul %0, %1, %cst {dimension_numbers = #tpu.dot_dimension_numbers<[1], [0], [0], [1], [0, 0, 1, 1], [], []>} : vector<8x256xbf16>, vector<256x32xbf16>, vector<8x32xf32> -> vector<8x32xf32>
    %c0_3 = arith.constant 0 : index
    %c0_4 = arith.constant 0 : index
    %3 = vector.load %arg3[%c0_3, %c0_4] : memref<1x32xf32, #tpu.memory_space<vmem>>, vector<1x32xf32>
    %4 = vector.broadcast %3 : vector<1x32xf32> to vector<8x32xf32>
    %5 = arith.addf %2, %4 : vector<8x32xf32>
    %c0_5 = arith.constant 0 : index
    %c0_6 = arith.constant 0 : index
    %6 = vector.load %arg4[%c0_5, %c0_6] : memref<8x32xf32, #tpu.memory_space<vmem>>, vector<8x32xf32>
    tpu.vector_store %arg4[%c0_5, %c0_6], %5 {strides = array<i32>} : memref<8x32xf32, #tpu.memory_space<vmem>>, vector<8x32xf32>,
    return
  }
  func.func @transform_0(%arg0: i32) -> (i32, i32) {
    %c0_i32 = arith.constant 0 : i32
    %c0_i32_0 = arith.constant 0 : i32
    return %arg0, %c0_i32 : i32, i32
  }
  func.func @transform_1(%arg0: i32) -> (i32, i32) {
    %c0_i32 = arith.constant 0 : i32
    %c0_i32_0 = arith.constant 0 : i32
    %c0_i32_1 = arith.constant 0 : i32
    return %c0_i32, %c0_i32_0 : i32, i32
  }
  func.func @transform_2(%arg0: i32) -> (i32, i32) {
    %c0_i32 = arith.constant 0 : i32
    %c0_i32_0 = arith.constant 0 : i32
    %c0_i32_1 = arith.constant 0 : i32
    return %c0_i32, %c0_i32_0 : i32, i32
  }
  func.func @transform_3(%arg0: i32) -> (i32, i32) {
    %c0_i32 = arith.constant 0 : i32
    %c0_i32_0 = arith.constant 0 : i32
    return %arg0, %c0_i32 : i32, i32
  }
}

</mosaic_0001>

<bundles_post_ra>
// kernel: tpu_custom_call.1
= control target key start
LH: loop header
LB: loop body
LE: loop exit
PB: predicated region body
PF: predicated region fallthrough
CT: control target
= control target key end

     0   :  { %s385_s0 = inlined_call_operand.vmem [shape: bf16[8,256], index: 0, kind: input, shape index: {}]   ;;  %s386_s1 = inlined_call_operand.vmem [shape: bf16[256,32], index: 1, kind: input, shape index: {}]   ;;  %s387_s2 = inlined_call_operand.vmem [shape: f32[1,32], index: 2, kind: input, shape index: {}]   ;;  %s388_s3 = inlined_call_operand.hbm [shape: f32[8,32], index: 3, kind: output, shape index: {}]  }
   0x1   :  { %v270_v0 = vld [vmem:[%s386_s1 + $0x38] sm:$0xff]  ;;  %v269_v2 = vld [vmem:[%s386_s1 + $0x30] sm:$0xff]  ;;  %v268_v4 = vld [vmem:[%s386_s1 + $0x28] sm:$0xff] }
   0x2   :  { %v278_v1 = vld [vmem:[%s386_s1 + $0x78] sm:$0xff]  ;;  %155 = vmatpush.bf16.msra.mxu0 %v270_v0  ;;  %v277_v3 = vld [vmem:[%s386_s1 + $0x70] sm:$0xff]  ;;  %v276_v5 = vld [vmem:[%s386_s1 + $0x68] sm:$0xff] }
   0x3   :  { %168 = vmatpush.bf16.msra.mxu1 %v278_v1 }
   0x6   :  { %156 = vmatpush.bf16.msra.mxu0 %v269_v2 }
   0x7   :  { %169 = vmatpush.bf16.msra.mxu1 %v277_v3 }
   0x8   :  { %8 = vsyncpa [#allocation3], 0  ;;  %v267_v6 = vld [vmem:[%s386_s1 + $0x20] sm:$0xff]  ;;  %v266_v8 = vld [vmem:[%s386_s1 + $0x18] sm:$0xff]  ;;  %s307_s20 = smov [#allocation2]   ;;  %s190_s24 = sshll.u32 %s388_s3, 4  ;;  %s191_s24 = int_to_ptr.hbm [resolvable:$true] %s190_s24 }
   0x9   :  { %v275_v7 = vld [vmem:[%s386_s1 + $0x60] sm:$0xff]  ;;  %v274_v9 = vld [vmem:[%s386_s1 + $0x58] sm:$0xff]  ;;  %v265_v10 = vld [vmem:[%s386_s1 + $0x10] sm:$0xff]  ;;  %s188_s21 = sshll.u32 %s307_s20, 4  ;;  %vm181_vm0 = vcmask 261120   ;;  %s189_s21 = int_to_ptr.vmem [resolvable:$true] %s188_s21 }
   0xa   :  { %157 = vmatpush.bf16.msra.mxu0 %v268_v4  ;;  %v273_v11 = vld [vmem:[%s386_s1 + $0x50] sm:$0xff]  ;;  %v264_v12 = vld [vmem:[%s386_s1 + $0x8] sm:$0xff]  ;;  %v15_v14 = vld [vmem:[%s385_s0] sm:$0xff] }
   0xb   :  { %170 = vmatpush.bf16.msra.mxu1 %v276_v5  ;;  %v272_v13 = vld [vmem:[%s386_s1 + $0x48] sm:$0xff]  ;;  %v53_v15 = vunpack.c.l.b16 %v15_v14  ;;  %v54_v16 = vunpack.c.h.b16 %v15_v14  ;;  %v263_v17 = vld [vmem:[%s386_s1] sm:$0xff] }
   0xc   :  { %v271_v18 = vld [vmem:[%s386_s1 + $0x40] sm:$0xff] }
   0xd   :  { %v55_v19 = vpack.c.b16 %v53_v15, %v53_v15  ;;  %v56_v20 = vpack.c.b16 %v54_v16, %v54_v16  ;;  %v280_v21 = vld [vmem:[%s387_s2] ss:$0 sm:$0xff] }
   0xe   :  { %158 = vmatpush.bf16.msra.mxu0 %v267_v6 }
   0xf   :  { %171 = vmatpush.bf16.msra.mxu1 %v275_v7 }
  0x12   :  { %159 = vmatpush.bf16.msra.mxu0 %v266_v8 }
  0x13   :  { %172 = vmatpush.bf16.msra.mxu1 %v274_v9 }
  0x16   :  { %160 = vmatpush.bf16.msra.mxu0 %v265_v10 }
  0x17   :  { %173 = vmatpush.bf16.msra.mxu1 %v273_v11 }
  0x1a   :  { %161 = vmatpush.bf16.msra.mxu0 %v264_v12 }
  0x1b   :  { %174 = vmatpush.bf16.msra.mxu1 %v272_v13 }
  0x1e   :  { %162 = vmatpush.bf16.msra.mxu0 %v263_v17 }
  0x1f   :  { %175 = vmatpush.bf16.msra.mxu1 %v271_v18 }
  0x21   :  { %163 = vmatmul.bf16.vlgmr.msra.gmra.mxu0 %v55_v19 }
  0x22   :  { %176 = vmatmul.bf16.vlgmr.msra.gmra.mxu1 %v56_v20 }
  0x9e   :  { %v164_v22 = vpop.f32.mrf.mxu0 }
  0x9f   :  { %v177_v23 = vpop.f32.mrf.mxu1  ;;  %v165_v24 = vadd.f32 %v280_v21, %v164_v22 }
  0xa1   :  { %v178_v25 = vadd.f32 %v177_v23, %v165_v24 }
  0xa3   :  { %182 = vst.msk [vmem:[#allocation2] sm:$0xff] %vm181_vm0, %v178_v25 }
  0xa4   :  { %193 = dma.vmem_to_hbm [thread:$0]  %s189_s21, 128, %s191_s24, [#allocation3]  }
  0xa6   :  { %v166_v26 = vpop.f32.mrf.mxu0 }
  0xa7   :  { %v179_v27 = vpop.f32.mrf.mxu1 }
  0xa8   :  { %305 = dma.done.wait [#allocation3], 128  }
  0xa9   :  { %306 = vsyncadd [#allocation3], 4294967168 }
  0xaa   :  { %198 = vsyncpa [#allocation3], 1 }

</bundles_post_ra>
